<compile_context>
chip_gen: v7x
topology: tpu7x:2x2x1
jax: 0.10.0
libtpu: 0.0.40
codegen_flags: <defaults>
</compile_context>

<pallas_src>
import functools

import jax
import jax.numpy as jnp
from jax.experimental import pallas as pl
from jax.experimental.pallas import tpu as pltpu

_LANE = 128


def _round_up(x, m):
    return ((x + m - 1) // m) * m


def _num_tensorcores():
    """Best-effort TensorCore count of device 0 (v7x -> 2, v5e/v6e -> 1)."""
    try:
        return max(1, int(getattr(jax.devices()[0], "num_cores", 1)))
    except Exception:
        return 1


def choose_block_b(batch, num_tensorcores=1, max_block=1024):
    """Batch tile: balanced across TensorCores, rounded up to 16 rows
    (bf16 tiles pack two rows per sublane -> minimum clean tile is (16, 128))."""
    per_core = -(-batch // max(1, num_tensorcores))
    return max(16, min(_round_up(per_core, 16), max_block))


def prepare_params(params, compute_dtype=jnp.bfloat16):
    """One-time weight prep, OUTSIDE the per-call hot path:
       * zero-pad the output layer to a multiple of 128 lanes,
       * cast matmul operands to compute_dtype (bf16 MXU path by default),
       * keep biases in f32 (added to the f32 MXU accumulator).
    Returns (prepped_params, act_dim)."""
    w1, b1, w2, b2, w3, b3, w4, b4 = params
    act_dim = w4.shape[1]
    out_lanes = _round_up(act_dim, _LANE)
    if out_lanes != act_dim:
        w4 = jnp.pad(w4, ((0, 0), (0, out_lanes - act_dim)))
        b4 = jnp.pad(b4, ((0, 0), (0, out_lanes - act_dim)))
    prepped = (
        w1.astype(compute_dtype), b1.astype(jnp.float32),
        w2.astype(compute_dtype), b2.astype(jnp.float32),
        w3.astype(compute_dtype), b3.astype(jnp.float32),
        w4.astype(compute_dtype), b4.astype(jnp.float32),
    )
    return prepped, act_dim


def _inverse_model_kernel(z_ref, zn_ref,
                          w1_ref, b1_ref,
                          w2_ref, b2_ref,
                          w3_ref, b3_ref,
                          w4_ref, b4_ref,
                          o_ref):
    """Fused 4-layer MLP: (Linear+ReLU) x3 -> Linear -> Tanh.

    The concat of (z, z_next) happens in VMEM (lane concat, XLU); all matmuls
    accumulate in f32 on the MXU; bias/ReLU/tanh run in f32 on the VPU/EUP.
    The output tile is 128 lanes wide (zero-padded W4/b4) -> unmasked stores.
    """
    cd = w1_ref.dtype  # MXU operand dtype (bf16 or f32)

    # Layer 1: single K = 2*latent_dim matmul on the in-VMEM concatenation.
    x = jnp.concatenate([z_ref[...], zn_ref[...]], axis=-1)
    h = jnp.dot(x, w1_ref[...], preferred_element_type=jnp.float32) + b1_ref[...]
    h = jnp.maximum(h, 0.0)

    h = jnp.dot(h.astype(cd), w2_ref[...],
                preferred_element_type=jnp.float32) + b2_ref[...]
    h = jnp.maximum(h, 0.0)

    h = jnp.dot(h.astype(cd), w3_ref[...],
                preferred_element_type=jnp.float32) + b3_ref[...]
    h = jnp.maximum(h, 0.0)

    out = jnp.dot(h.astype(cd), w4_ref[...],
                  preferred_element_type=jnp.float32) + b4_ref[...]
    o_ref[...] = jnp.tanh(out).astype(o_ref.dtype)


@functools.partial(jax.jit, static_argnames=("act_dim", "block_b"))
def _inverse_model_jit(z, z_next, prepped, act_dim, block_b):
    w1, b1, w2, b2, w3, b3, w4, b4 = prepped
    B, latent_dim = z.shape
    hidden = w1.shape[1]
    out_lanes = w4.shape[1]
    compute_dtype = w1.dtype

    n_blocks = pl.cdiv(B, block_b)
    padded_b = n_blocks * block_b

    zc = z.astype(compute_dtype)
    znc = z_next.astype(compute_dtype)
    if padded_b != B:  # pad only when needed (extra copy skipped otherwise)
        pad = padded_b - B
        zc = jnp.pad(zc, ((0, pad), (0, 0)))
        znc = jnp.pad(znc, ((0, pad), (0, 0)))

    def batch_map(i):
        return (i, 0)

    def fixed_map(i):
        # Constant block index => weights/biases fetched once, VMEM-resident.
        return (0, 0)

    resident = pl.Buffered(1)  # single buffer for resident weights/biases

    out = pl.pallas_call(
        _inverse_model_kernel,
        out_shape=jax.ShapeDtypeStruct((padded_b, out_lanes), jnp.float32),
        grid_spec=pltpu.PrefetchScalarGridSpec(
            num_scalar_prefetch=0,
            grid=(n_blocks,),
            in_specs=[
                pl.BlockSpec((block_b, latent_dim), batch_map),   # z tile
                pl.BlockSpec((block_b, latent_dim), batch_map),   # z_next tile
                pl.BlockSpec((2 * latent_dim, hidden), fixed_map,
                             pipeline_mode=resident),             # W1
                pl.BlockSpec((1, hidden), fixed_map,
                             pipeline_mode=resident),             # b1
                pl.BlockSpec((hidden, hidden), fixed_map,
                             pipeline_mode=resident),             # W2
                pl.BlockSpec((1, hidden), fixed_map,
                             pipeline_mode=resident),             # b2
                pl.BlockSpec((hidden, hidden), fixed_map,
                             pipeline_mode=resident),             # W3
                pl.BlockSpec((1, hidden), fixed_map,
                             pipeline_mode=resident),             # b3
                pl.BlockSpec((hidden, out_lanes), fixed_map,
                             pipeline_mode=resident),             # W4 (lane-padded)
                pl.BlockSpec((1, out_lanes), fixed_map,
                             pipeline_mode=resident),             # b4 (lane-padded)
            ],
            out_specs=pl.BlockSpec((block_b, out_lanes), batch_map),
        ),
        compiler_params=pltpu.CompilerParams(
            dimension_semantics=("parallel",)),   # megacore-shardable on v7x
    )(zc, znc, w1, b1, w2, b2, w3, b3, w4, b4)

    return out[:B, :act_dim]


def inverse_model_forward(z, z_next, prepped, act_dim, block_b=None):
    """Thin non-jit wrapper: picks a generation-aware batch tile, then calls
    the jitted pallas_call path with already-prepared parameters."""
    if block_b is None:
        block_b = choose_block_b(z.shape[0], _num_tensorcores())
    return _inverse_model_jit(z, z_next, prepped, act_dim, block_b)


def init_params(key, latent_dim, action_dim, hidden=128):
    """Deterministic synthetic init (uniform(-1/sqrt(fan_in), 1/sqrt(fan_in)),
    same scheme as torch.nn.Linear default). Weights stored as (in, out)."""
    dims = [(2 * latent_dim, hidden), (hidden, hidden),
            (hidden, hidden), (hidden, action_dim)]
    params = []
    for (fan_in, fan_out) in dims:
        key, kw, kb = jax.random.split(key, 3)
        bound = 1.0 / jnp.sqrt(fan_in)
        w = jax.random.uniform(kw, (fan_in, fan_out), jnp.float32, -bound, bound)
        b = jax.random.uniform(kb, (1, fan_out), jnp.float32, -bound, bound)
        params += [w, b]
    return tuple(params)


def reference_forward(z, z_next, params):
    """Pure-JAX reference of the PyTorch module for verification."""
    w1, b1, w2, b2, w3, b3, w4, b4 = params
    x = jnp.concatenate([z, z_next], axis=1)
    h = jax.nn.relu(x @ w1 + b1)
    h = jax.nn.relu(h @ w2 + b2)
    h = jax.nn.relu(h @ w3 + b3)
    return jnp.tanh(h @ w4 + b4)


if __name__ == "__main__":
    latent_dim = 32
    action_dim = 8
    batch = 200   # not a multiple of 16 -> exercises the padding + back-slice path

    key = jax.random.PRNGKey(0)
    kz, kzn, kp = jax.random.split(key, 3)
    z = jax.random.normal(kz, (batch, latent_dim), jnp.float32)
    z_next = jax.random.normal(kzn, (batch, latent_dim), jnp.float32)
    params = init_params(kp, latent_dim, action_dim)

    ref = reference_forward(z, z_next, params)

    # Exact-precision path (f32 MXU operands), auto block_b
    # (single grid step on 1-TC chips, two balanced steps if 2 TCs detected).
    prepped_f32, act_dim = prepare_params(params, jnp.float32)
    out_f32 = jax.block_until_ready(
        inverse_model_forward(z, z_next, prepped_f32, act_dim))
    assert out_f32.shape == (batch, action_dim)
    assert jnp.allclose(out_f32, ref, atol=1e-5, rtol=1e-5), "f32 mismatch"

    # Same path, explicit two balanced grid steps (v7x-style megacore split).
    out_2step = jax.block_until_ready(
        inverse_model_forward(z, z_next, prepped_f32, act_dim,
                              block_b=choose_block_b(batch, 2)))
    assert out_2step.shape == (batch, action_dim)
    assert jnp.allclose(out_2step, ref, atol=1e-5, rtol=1e-5), "2-step mismatch"

    # Fast path (bf16 MXU operands, f32 accumulation) — loose tolerance.
    prepped_bf16, _ = prepare_params(params, jnp.bfloat16)
    out_bf16 = jax.block_until_ready(
        inverse_model_forward(z, z_next, prepped_bf16, act_dim))
    assert out_bf16.shape == (batch, action_dim)
    assert jnp.allclose(out_bf16, ref, atol=3e-2, rtol=3e-2), "bf16 mismatch"

    print("KERNEL_OK")
</pallas_src>

<mosaic_0001>
module attributes {stable_mosaic.version = 11 : i64} {
  func.func @_inverse_model_kernel(%arg0: i32, %arg1: memref<208x32xf32, #tpu.memory_space<vmem>>, %arg2: memref<208x32xf32, #tpu.memory_space<vmem>>, %arg3: memref<64x128xf32, #tpu.memory_space<vmem>>, %arg4: memref<1x128xf32, #tpu.memory_space<vmem>>, %arg5: memref<128x128xf32, #tpu.memory_space<vmem>>, %arg6: memref<1x128xf32, #tpu.memory_space<vmem>>, %arg7: memref<128x128xf32, #tpu.memory_space<vmem>>, %arg8: memref<1x128xf32, #tpu.memory_space<vmem>>, %arg9: memref<128x128xf32, #tpu.memory_space<vmem>>, %arg10: memref<1x128xf32, #tpu.memory_space<vmem>>, %arg11: memref<208x128xf32, #tpu.memory_space<vmem>>) attributes {dimension_semantics = [#tpu.dimension_semantics<parallel>], iteration_bounds = array<i64: 1>, scalar_prefetch = 0 : i64, scratch_operands = 0 : i64, tpu.core_type = #tpu.core_type<tc>, window_params = [{transform_indices = @transform_0, window_bounds = array<i64: 208, 32>}, {transform_indices = @transform_1, window_bounds = array<i64: 208, 32>}, {pipeline_mode = #tpu.pipeline_mode<synchronous>, transform_indices = @transform_2, window_bounds = array<i64: 64, 128>}, {pipeline_mode = #tpu.pipeline_mode<synchronous>, transform_indices = @transform_3, window_bounds = array<i64: 1, 128>}, {pipeline_mode = #tpu.pipeline_mode<synchronous>, transform_indices = @transform_4, window_bounds = array<i64: 128, 128>}, {pipeline_mode = #tpu.pipeline_mode<synchronous>, transform_indices = @transform_5, window_bounds = array<i64: 1, 128>}, {pipeline_mode = #tpu.pipeline_mode<synchronous>, transform_indices = @transform_6, window_bounds = array<i64: 128, 128>}, {pipeline_mode = #tpu.pipeline_mode<synchronous>, transform_indices = @transform_7, window_bounds = array<i64: 1, 128>}, {pipeline_mode = #tpu.pipeline_mode<synchronous>, transform_indices = @transform_8, window_bounds = array<i64: 128, 128>}, {pipeline_mode = #tpu.pipeline_mode<synchronous>, transform_indices = @transform_9, window_bounds = array<i64: 1, 128>}, {transform_indices = @transform_10, window_bounds = array<i64: 208, 128>}]} {
    %c0 = arith.constant 0 : index
    %c0_0 = arith.constant 0 : index
    %0 = vector.load %arg1[%c0, %c0_0] : memref<208x32xf32, #tpu.memory_space<vmem>>, vector<208x32xf32>
    %c0_1 = arith.constant 0 : index
    %c0_2 = arith.constant 0 : index
    %1 = vector.load %arg2[%c0_1, %c0_2] : memref<208x32xf32, #tpu.memory_space<vmem>>, vector<208x32xf32>
    %2 = tpu.concatenate %0, %1 in 1 : vector<208x32xf32>, vector<208x32xf32> -> vector<208x64xf32>
    %c0_3 = arith.constant 0 : index
    %c0_4 = arith.constant 0 : index
    %3 = vector.load %arg3[%c0_3, %c0_4] : memref<64x128xf32, #tpu.memory_space<vmem>>, vector<64x128xf32>
    %cst = arith.constant dense<0.000000e+00> : vector<208x128xf32>
    %4 = tpu.matmul %2, %3, %cst {dimension_numbers = #tpu.dot_dimension_numbers<[1], [0], [0], [1], [0, 0, 1, 1], [], []>} : vector<208x64xf32>, vector<64x128xf32>, vector<208x128xf32> -> vector<208x128xf32>
    %c0_5 = arith.constant 0 : index
    %c0_6 = arith.constant 0 : index
    %5 = vector.load %arg4[%c0_5, %c0_6] : memref<1x128xf32, #tpu.memory_space<vmem>>, vector<1x128xf32>
    %6 = vector.broadcast %5 : vector<1x128xf32> to vector<208x128xf32>
    %7 = arith.addf %4, %6 : vector<208x128xf32>
    %cst_7 = arith.constant 0.000000e+00 : f32
    %8 = vector.broadcast %cst_7 : f32 to vector<208x128xf32>
    %9 = arith.maximumf %7, %8 : vector<208x128xf32>
    %c0_8 = arith.constant 0 : index
    %c0_9 = arith.constant 0 : index
    %10 = vector.load %arg5[%c0_8, %c0_9] : memref<128x128xf32, #tpu.memory_space<vmem>>, vector<128x128xf32>
    %cst_10 = arith.constant dense<0.000000e+00> : vector<208x128xf32>
    %11 = tpu.matmul %9, %10, %cst_10 {dimension_numbers = #tpu.dot_dimension_numbers<[1], [0], [0], [1], [0, 0, 1, 1], [], []>} : vector<208x128xf32>, vector<128x128xf32>, vector<208x128xf32> -> vector<208x128xf32>
    %c0_11 = arith.constant 0 : index
    %c0_12 = arith.constant 0 : index
    %12 = vector.load %arg6[%c0_11, %c0_12] : memref<1x128xf32, #tpu.memory_space<vmem>>, vector<1x128xf32>
    %13 = vector.broadcast %12 : vector<1x128xf32> to vector<208x128xf32>
    %14 = arith.addf %11, %13 : vector<208x128xf32>
    %cst_13 = arith.constant 0.000000e+00 : f32
    %15 = vector.broadcast %cst_13 : f32 to vector<208x128xf32>
    %16 = arith.maximumf %14, %15 : vector<208x128xf32>
    %c0_14 = arith.constant 0 : index
    %c0_15 = arith.constant 0 : index
    %17 = vector.load %arg7[%c0_14, %c0_15] : memref<128x128xf32, #tpu.memory_space<vmem>>, vector<128x128xf32>
    %cst_16 = arith.constant dense<0.000000e+00> : vector<208x128xf32>
    %18 = tpu.matmul %16, %17, %cst_16 {dimension_numbers = #tpu.dot_dimension_numbers<[1], [0], [0], [1], [0, 0, 1, 1], [], []>} : vector<208x128xf32>, vector<128x128xf32>, vector<208x128xf32> -> vector<208x128xf32>
    %c0_17 = arith.constant 0 : index
    %c0_18 = arith.constant 0 : index
    %19 = vector.load %arg8[%c0_17, %c0_18] : memref<1x128xf32, #tpu.memory_space<vmem>>, vector<1x128xf32>
    %20 = vector.broadcast %19 : vector<1x128xf32> to vector<208x128xf32>
    %21 = arith.addf %18, %20 : vector<208x128xf32>
    %cst_19 = arith.constant 0.000000e+00 : f32
    %22 = vector.broadcast %cst_19 : f32 to vector<208x128xf32>
    %23 = arith.maximumf %21, %22 : vector<208x128xf32>
    %c0_20 = arith.constant 0 : index
    %c0_21 = arith.constant 0 : index
    %24 = vector.load %arg9[%c0_20, %c0_21] : memref<128x128xf32, #tpu.memory_space<vmem>>, vector<128x128xf32>
    %cst_22 = arith.constant dense<0.000000e+00> : vector<208x128xf32>
    %25 = tpu.matmul %23, %24, %cst_22 {dimension_numbers = #tpu.dot_dimension_numbers<[1], [0], [0], [1], [0, 0, 1, 1], [], []>} : vector<208x128xf32>, vector<128x128xf32>, vector<208x128xf32> -> vector<208x128xf32>
    %c0_23 = arith.constant 0 : index
    %c0_24 = arith.constant 0 : index
    %26 = vector.load %arg10[%c0_23, %c0_24] : memref<1x128xf32, #tpu.memory_space<vmem>>, vector<1x128xf32>
    %27 = vector.broadcast %26 : vector<1x128xf32> to vector<208x128xf32>
    %28 = arith.addf %25, %27 : vector<208x128xf32>
    %29 = math.tanh %28 : vector<208x128xf32>
    %c0_25 = arith.constant 0 : index
    %c0_26 = arith.constant 0 : index
    %30 = vector.load %arg11[%c0_25, %c0_26] : memref<208x128xf32, #tpu.memory_space<vmem>>, vector<208x128xf32>
    tpu.vector_store %arg11[%c0_25, %c0_26], %29 {strides = array<i32>} : memref<208x128xf32, #tpu.memory_space<vmem>>, vector<208x128xf32>,
    return
  }
  func.func @transform_0(%arg0: i32) -> (i32, i32) {
    %c0_i32 = arith.constant 0 : i32
    %c0_i32_0 = arith.constant 0 : i32
    return %arg0, %c0_i32 : i32, i32
  }
  func.func @transform_1(%arg0: i32) -> (i32, i32) {
    %c0_i32 = arith.constant 0 : i32
    %c0_i32_0 = arith.constant 0 : i32
    return %arg0, %c0_i32 : i32, i32
  }
  func.func @transform_2(%arg0: i32) -> (i32, i32) {
    %c0_i32 = arith.constant 0 : i32
    %c0_i32_0 = arith.constant 0 : i32
    %c0_i32_1 = arith.constant 0 : i32
    return %c0_i32, %c0_i32_0 : i32, i32
  }
  func.func @transform_3(%arg0: i32) -> (i32, i32) {
    %c0_i32 = arith.constant 0 : i32
    %c0_i32_0 = arith.constant 0 : i32
    %c0_i32_1 = arith.constant 0 : i32
    return %c0_i32, %c0_i32_0 : i32, i32
  }
  func.func @transform_4(%arg0: i32) -> (i32, i32) {
    %c0_i32 = arith.constant 0 : i32
    %c0_i32_0 = arith.constant 0 : i32
    %c0_i32_1 = arith.constant 0 : i32
    return %c0_i32, %c0_i32_0 : i32, i32
  }
  func.func @transform_5(%arg0: i32) -> (i32, i32) {
    %c0_i32 = arith.constant 0 : i32
    %c0_i32_0 = arith.constant 0 : i32
    %c0_i32_1 = arith.constant 0 : i32
    return %c0_i32, %c0_i32_0 : i32, i32
  }
  func.func @transform_6(%arg0: i32) -> (i32, i32) {
    %c0_i32 = arith.constant 0 : i32
    %c0_i32_0 = arith.constant 0 : i32
    %c0_i32_1 = arith.constant 0 : i32
    return %c0_i32, %c0_i32_0 : i32, i32
  }
  func.func @transform_7(%arg0: i32) -> (i32, i32) {
    %c0_i32 = arith.constant 0 : i32
    %c0_i32_0 = arith.constant 0 : i32
    %c0_i32_1 = arith.constant 0 : i32
    return %c0_i32, %c0_i32_0 : i32, i32
  }
  func.func @transform_8(%arg0: i32) -> (i32, i32) {
    %c0_i32 = arith.constant 0 : i32
    %c0_i32_0 = arith.constant 0 : i32
    %c0_i32_1 = arith.constant 0 : i32
    return %c0_i32, %c0_i32_0 : i32, i32
  }
  func.func @transform_9(%arg0: i32) -> (i32, i32) {
    %c0_i32 = arith.constant 0 : i32
    %c0_i32_0 = arith.constant 0 : i32
    %c0_i32_1 = arith.constant 0 : i32
    return %c0_i32, %c0_i32_0 : i32, i32
  }
  func.func @transform_10(%arg0: i32) -> (i32, i32) {
    %c0_i32 = arith.constant 0 : i32
    %c0_i32_0 = arith.constant 0 : i32
    return %arg0, %c0_i32 : i32, i32
  }
}

</mosaic_0001>

<bundles_post_ra>
// kernel: _inverse_model_jit.1
= control target key start
LH: loop header
LB: loop body
LE: loop exit
PB: predicated region body
PF: predicated region fallthrough
CT: control target
= control target key end

     0   :  { %s1934_s17 = smov 32   ;;  %vm191_vm0 = vcmask 261120   ;;  %vm233_vm1 = vcmask 523264   ;;  %s2618_s1 = inlined_call_operand.vmem [shape: f32[208,32], index: 1, kind: input, shape index: {}]   ;;  %s2619_s2 = inlined_call_operand.vmem [shape: f32[64,128], index: 2, kind: input, shape index: {}]   ;;  %s2620_s4 = inlined_call_operand.vmem [shape: f32[128,128], index: 4, kind: input, shape index: {}]   ;;  %s2621_s0 = inlined_call_operand.vmem [shape: f32[208,32], index: 0, kind: input, shape index: {}]   ;;  %s2622_s6 = inlined_call_operand.vmem [shape: f32[128,128], index: 6, kind: input, shape index: {}]   ;;  %s2623_s3 = inlined_call_operand.vmem [shape: f32[1,128], index: 3, kind: input, shape index: {}]   ;;  %s2624_s8 = inlined_call_operand.vmem [shape: f32[128,128], index: 8, kind: input, shape index: {}]   ;;  %s2625_s5 = inlined_call_operand.vmem [shape: f32[1,128], index: 5, kind: input, shape index: {}]   ;;  %s2626_s7 = inlined_call_operand.vmem [shape: f32[1,128], index: 7, kind: input, shape index: {}]   ;;  %s2627_s9 = inlined_call_operand.vmem [shape: f32[1,128], index: 9, kind: input, shape index: {}]   ;;  %s2628_s10 = inlined_call_operand.vmem [shape: f32[208,128], index: 10, kind: output, shape index: {}]  }
   0x1   :  { %v61_v0 = vld [vmem:[%s2618_s1] sm:$0xff]  ;;  %v63_v1 = vld [vmem:[%s2618_s1 + $0x10] sm:$0xff]  ;;  %v62_v2 = vld [vmem:[%s2618_s1 + $0x8] sm:$0xff] }
   0x2   :  { %113 = vrot.lane.b32.xlu0 %v61_v0, %s1934_s17  ;;  %117 = vrot.lane.b32.xlu1 %v63_v1, %s1934_s17  ;;  %v64_v3 = vld [vmem:[%s2618_s1 + $0x18] sm:$0xff]  ;;  %v65_v4 = vld [vmem:[%s2618_s1 + $0x20] sm:$0xff] }
   0x3   :  { %v66_v5 = vld [vmem:[%s2618_s1 + $0x28] sm:$0xff]  ;;  %v67_v6 = vld [vmem:[%s2618_s1 + $0x30] sm:$0xff]  ;;  %v68_v7 = vld [vmem:[%s2618_s1 + $0x38] sm:$0xff] }
   0x4   :  { %v218_v8 = vld [vmem:[%s2619_s2] sm:$0xff]  ;;  %v219_v9 = vld [vmem:[%s2619_s2 + $0x8] sm:$0xff]  ;;  %v220_v10 = vld [vmem:[%s2619_s2 + $0x10] sm:$0xff] }
   0x5   :  { %v221_v11 = vld [vmem:[%s2619_s2 + $0x18] sm:$0xff]  ;;  %v1753_v12 = vpack.c.bf16 %v219_v9, %v218_v8  ;;  %v222_v14 = vld [vmem:[%s2619_s2 + $0x20] sm:$0xff]  ;;  %v223_v15 = vld [vmem:[%s2619_s2 + $0x28] sm:$0xff] }
   0x6   :  { %115 = vrot.lane.b32.xlu0 %v62_v2, %s1934_s17  ;;  %119 = vrot.lane.b32.xlu1 %v64_v3, %s1934_s17  ;;  %v1757_v13 = vpack.c.bf16 %v221_v11, %v220_v10  ;;  %v69_v16 = vld [vmem:[%s2618_s1 + $0x40] sm:$0xff]  ;;  %v70_v17 = vld [vmem:[%s2618_s1 + $0x48] sm:$0xff]  ;;  %v1761_v18 = vpack.c.bf16 %v223_v15, %v222_v14 }
   0x7   :  { %1754 = vmatprep.subr.bf16.mxu0 %v1753_v12  ;;  %v224_v19 = vld [vmem:[%s2619_s2 + $0x30] sm:$0xff]  ;;  %v225_v20 = vld [vmem:[%s2619_s2 + $0x38] sm:$0xff]  ;;  %v73_v24 = vld [vmem:[%s2618_s1 + $0x60] sm:$0xff] }
   0x8   :  { %1756 = vmatpush3.bf16.msra.mxu0 %v1753_v12  ;;  %v71_v21 = vld [vmem:[%s2618_s1 + $0x50] sm:$0xff]  ;;  %v72_v22 = vld [vmem:[%s2618_s1 + $0x58] sm:$0xff]  ;;  %v1765_v23 = vpack.c.bf16 %v225_v20, %v224_v19  ;;  %v74_v25 = vld [vmem:[%s2618_s1 + $0x68] sm:$0xff] }
   0x9   :  { %1758 = vmatprep.subr.bf16.mxu0 %v1757_v13  ;;  %v75_v26 = vld [vmem:[%s2618_s1 + $0x70] sm:$0xff]  ;;  %v76_v27 = vld [vmem:[%s2618_s1 + $0x78] sm:$0xff]  ;;  %v77_v28 = vld [vmem:[%s2618_s1 + $0x80] sm:$0xff] }
   0xa   :  { %121 = vrot.lane.b32.xlu0 %v65_v4, %s1934_s17  ;;  %123 = vrot.lane.b32.xlu1 %v66_v5, %s1934_s17  ;;  %v78_v29 = vld [vmem:[%s2618_s1 + $0x88] sm:$0xff]  ;;  %v79_v30 = vld [vmem:[%s2618_s1 + $0x90] sm:$0xff] }
   0xb   :  { %v80_v31 = vld [vmem:[%s2618_s1 + $0x98] sm:$0xff]  ;;  %v81_v32 = vld [vmem:[%s2618_s1 + $0xa0] sm:$0xff]  ;;  %v82_v33 = vld [vmem:[%s2618_s1 + $0xa8] sm:$0xff] }
   0xc   :  { %1760 = vmatpush3.bf16.msra.mxu0 %v1757_v13  ;;  %v83_v34 = vld [vmem:[%s2618_s1 + $0xb0] sm:$0xff]  ;;  %v84_v35 = vld [vmem:[%s2618_s1 + $0xb8] sm:$0xff]  ;;  %v533_v36 = vld [vmem:[%s2620_s4] sm:$0xff] }
   0xd   :  { %1762 = vmatprep.subr.bf16.mxu0 %v1761_v18  ;;  %v534_v37 = vld [vmem:[%s2620_s4 + $0x8] sm:$0xff]  ;;  %v535_v38 = vld [vmem:[%s2620_s4 + $0x10] sm:$0xff]  ;;  %v536_v40 = vld [vmem:[%s2620_s4 + $0x18] sm:$0xff] }
   0xe   :  { %125 = vrot.lane.b32.xlu0 %v67_v6, %s1934_s17  ;;  %127 = vrot.lane.b32.xlu1 %v68_v7, %s1934_s17  ;;  %v1769_v39 = vpack.c.bf16 %v534_v37, %v533_v36  ;;  %v1773_v41 = vpack.c.bf16 %v536_v40, %v535_v38  ;;  %v537_v42 = vld [vmem:[%s2620_s4 + $0x20] sm:$0xff]  ;;  %v538_v43 = vld [vmem:[%s2620_s4 + $0x28] sm:$0xff] }
   0xf   :  { %v85_v44 = vld [vmem:[%s2618_s1 + $0xc0] sm:$0xff]  ;;  %v86_v45 = vld [vmem:[%s2618_s1 + $0xc8] sm:$0xff]  ;;  %v1777_v46 = vpack.c.bf16 %v538_v43, %v537_v42  ;;  %v539_v47 = vld [vmem:[%s2620_s4 + $0x30] sm:$0xff] }
  0x10   :  { %1764 = vmatpush3.bf16.msra.mxu0 %v1761_v18  ;;  %1770 = vmatprep.subr.bf16.mxu1 %v1769_v39  ;;  %v540_v48 = vld [vmem:[%s2620_s4 + $0x38] sm:$0xff]  ;;  %v541_v50 = vld [vmem:[%s2620_s4 + $0x40] sm:$0xff]  ;;  %v542_v51 = vld [vmem:[%s2620_s4 + $0x48] sm:$0xff] }
  0x11   :  { %1766 = vmatprep.subr.bf16.mxu0 %v1765_v23  ;;  %1772 = vmatpush3.bf16.msra.mxu1 %v1769_v39  ;;  %v1781_v49 = vpack.c.bf16 %v540_v48, %v539_v47  ;;  %v1785_v52 = vpack.c.bf16 %v542_v51, %v541_v50  ;;  %v543_v53 = vld [vmem:[%s2620_s4 + $0x50] sm:$0xff]  ;;  %v544_v54 = vld [vmem:[%s2620_s4 + $0x58] sm:$0xff]  ;;  %v545_v56 = vld [vmem:[%s2620_s4 + $0x60] sm:$0xff] }
  0x12   :  { %129 = vrot.lane.b32.xlu0 %v69_v16, %s1934_s17  ;;  %131 = vrot.lane.b32.xlu1 %v70_v17, %s1934_s17  ;;  %v1789_v55 = vpack.c.bf16 %v544_v54, %v543_v53  ;;  %v546_v57 = vld [vmem:[%s2620_s4 + $0x68] sm:$0xff]  ;;  %v35_v59 = vld [vmem:[%s2621_s0] sm:$0xff] }
  0x13   :  { %1774 = vmatprep.subr.bf16.mxu1 %v1773_v41  ;;  %v1793_v58 = vpack.c.bf16 %v546_v57, %v545_v56  ;;  %v37_v63 = vld [vmem:[%s2621_s0 + $0x10] sm:$0xff]  ;;  %v36_v0 = vld [vmem:[%s2621_s0 + $0x8] sm:$0xff]  ;;  %v38_v4 = vld [vmem:[%s2621_s0 + $0x18] sm:$0xff] }
  0x14   :  { %1768 = vmatpush3.bf16.msra.mxu0 %v1765_v23  ;;  %v39_v6 = vld [vmem:[%s2621_s0 + $0x20] sm:$0xff]  ;;  %v40_v10 = vld [vmem:[%s2621_s0 + $0x28] sm:$0xff]  ;;  %v41_v12 = vld [vmem:[%s2621_s0 + $0x30] sm:$0xff] }
  0x15   :  { %1776 = vmatpush3.bf16.msra.mxu1 %v1773_v41  ;;  %v42_v16 = vld [vmem:[%s2621_s0 + $0x38] sm:$0xff]  ;;  %v43_v18 = vld [vmem:[%s2621_s0 + $0x40] sm:$0xff]  ;;  %v49_v36 = vld [vmem:[%s2621_s0 + $0x70] sm:$0xff] }
  0x16   :  { %133 = vrot.lane.b32.xlu0 %v71_v21, %s1934_s17  ;;  %135 = vrot.lane.b32.xlu1 %v72_v22, %s1934_s17  ;;  %v44_v22 = vld [vmem:[%s2621_s0 + $0x48] sm:$0xff]  ;;  %v50_v40 = vld [vmem:[%s2621_s0 + $0x78] sm:$0xff] }
  0x17   :  { %1778 = vmatprep.subr.bf16.mxu1 %v1777_v46  ;;  %v51_v42 = vld [vmem:[%s2621_s0 + $0x80] sm:$0xff]  ;;  %v53_v48 = vld [vmem:[%s2621_s0 + $0x90] sm:$0xff] }
  0x18   :  { %v55_v54 = vld [vmem:[%s2621_s0 + $0xa0] sm:$0xff] }
  0x19   :  { %1780 = vmatpush3.bf16.msra.mxu1 %v1777_v46  ;;  %v52_v46 = vld [vmem:[%s2621_s0 + $0x88] sm:$0xff] }
  0x1a   :  { %137 = vrot.lane.b32.xlu0 %v73_v24, %s1934_s17  ;;  %139 = vrot.lane.b32.xlu1 %v74_v25, %s1934_s17  ;;  %v45_v24 = vld [vmem:[%s2621_s0 + $0x50] sm:$0xff] }
  0x1b   :  { %1782 = vmatprep.subr.bf16.mxu1 %v1781_v49 }
  0x1d   :  { %1784 = vmatpush3.bf16.msra.mxu1 %v1781_v49 }
  0x1e   :  { %141 = vrot.lane.b32.xlu0 %v75_v26, %s1934_s17  ;;  %143 = vrot.lane.b32.xlu1 %v76_v27, %s1934_s17 }
  0x1f   :  { %1786 = vmatprep.subr.bf16.mxu1 %v1785_v52 }
  0x21   :  { %1788 = vmatpush3.bf16.msra.mxu1 %v1785_v52  ;;  %v54_v52 = vld [vmem:[%s2621_s0 + $0x98] sm:$0xff] }
  0x22   :  { %145 = vrot.lane.b32.xlu0 %v77_v28, %s1934_s17  ;;  %147 = vrot.lane.b32.xlu1 %v78_v29, %s1934_s17  ;;  %v46_v28 = vld [vmem:[%s2621_s0 + $0x58] sm:$0xff] }
  0x23   :  { %1790 = vmatprep.subr.bf16.mxu1 %v1789_v55 }
  0x25   :  { %1792 = vmatpush3.bf16.msra.mxu1 %v1789_v55 }
  0x26   :  { %149 = vrot.lane.b32.xlu0 %v79_v30, %s1934_s17  ;;  %151 = vrot.lane.b32.xlu1 %v80_v31, %s1934_s17  ;;  %v47_v30 = vld [vmem:[%s2621_s0 + $0x60] sm:$0xff] }
  0x27   :  { %1794 = vmatprep.subr.bf16.mxu1 %v1793_v58 }
  0x29   :  { %1796 = vmatpush3.bf16.msra.mxu1 %v1793_v58  ;;  %v56_v58 = vld [vmem:[%s2621_s0 + $0xa8] sm:$0xff] }
  0x2a   :  { %153 = vrot.lane.b32.xlu0 %v81_v32, %s1934_s17  ;;  %155 = vrot.lane.b32.xlu1 %v82_v33, %s1934_s17 }
  0x2e   :  { %157 = vrot.lane.b32.xlu0 %v83_v34, %s1934_s17  ;;  %159 = vrot.lane.b32.xlu1 %v84_v35, %s1934_s17  ;;  %v48_v34 = vld [vmem:[%s2621_s0 + $0x68] sm:$0xff] }
  0x32   :  { %161 = vrot.lane.b32.xlu0 %v85_v44, %s1934_s17  ;;  %163 = vrot.lane.b32.xlu1 %v86_v45, %s1934_s17 }
  0x74   :  { %v114_v60 = vpop.permute.xlu0 %113  ;;  %v118_v61 = vpop.permute.xlu1 %117 }
  0x75   :  { %v192_v62 = vsel %vm191_vm0, %v35_v59, %v114_v60  ;;  %v194_v1 = vsel %vm191_vm0, %v37_v63, %v118_v61  ;;  %v57_v60 = vld [vmem:[%s2621_s0 + $0xb0] sm:$0xff] }
  0x76   :  { %1501 = vmatprep.mubr.msk.f32.mxu0 %vm233_vm1, %v192_v62 }
  0x78   :  { %v116_v2 = vpop.permute.xlu0 %115  ;;  %v120_v3 = vpop.permute.xlu1 %119 }
  0x79   :  { %v193_v5 = vsel %vm191_vm0, %v36_v0, %v116_v2  ;;  %v195_v7 = vsel %vm191_vm0, %v38_v4, %v120_v3  ;;  %v58_v0 = vld [vmem:[%s2621_s0 + $0xb8] sm:$0xff]  ;;  %v59_v2 = vld [vmem:[%s2621_s0 + $0xc0] sm:$0xff] }
  0x7a   :  { %1502 = vmatmul.mubr.msk.f32.vlgmr.msra.gmra.mrb[0].mxu0 %vm233_vm1, %v193_v5 }
  0x7b   :  { %1504 = vmatprep.mubr.msk.f32.mxu0 %vm233_vm1, %v194_v1 }
  0x7c   :  { %v122_v8 = vpop.permute.xlu0 %121  ;;  %v124_v9 = vpop.permute.xlu1 %123 }
  0x7d   :  { %v196_v11 = vsel %vm191_vm0, %v39_v6, %v122_v8  ;;  %v197_v13 = vsel %vm191_vm0, %v40_v10, %v124_v9  ;;  %v60_v6 = vld [vmem:[%s2621_s0 + $0xc8] sm:$0xff]  ;;  %v547_v9 = vld [vmem:[%s2620_s4 + $0x70] sm:$0xff]  ;;  %v548_v10 = vld [vmem:[%s2620_s4 + $0x78] sm:$0xff] }
  0x7e   :  { %1505 = vmatmul.mubr.msk.f32.gmra.mrb[2].mxu0 %vm233_vm1, %v195_v7 }
  0x7f   :  { %1507 = vmatprep.mubr.msk.f32.mxu0 %vm233_vm1, %v196_v11  ;;  %v1797_v11 = vpack.c.bf16 %v548_v10, %v547_v9 }
  0x80   :  { %v126_v14 = vpop.permute.xlu0 %125  ;;  %v128_v15 = vpop.permute.xlu1 %127 }
  0x81   :  { %v198_v17 = vsel %vm191_vm0, %v41_v12, %v126_v14  ;;  %v199_v19 = vsel %vm191_vm0, %v42_v16, %v128_v15  ;;  %1798 = vmatprep.subr.bf16.mxu1 %v1797_v11  ;;  %v777_v12 = vld [vmem:[%s2622_s6] sm:$0xff]  ;;  %v779_v14 = vld [vmem:[%s2622_s6 + $0x10] sm:$0xff]  ;;  %v780_v16 = vld [vmem:[%s2622_s6 + $0x18] sm:$0xff] }
  0x82   :  { %1508 = vmatmul.mubr.msk.f32.gmra.mrb[4].mxu0 %vm233_vm1, %v197_v13  ;;  %1800 = vmatpush3.bf16.msra.mxu1 %v1797_v11  ;;  %v778_v13 = vld [vmem:[%s2622_s6 + $0x8] sm:$0xff] }
  0x83   :  { %1510 = vmatprep.mubr.msk.f32.mxu0 %vm233_vm1, %v198_v17  ;;  %v1801_v15 = vpack.c.bf16 %v778_v13, %v777_v12  ;;  %v1805_v17 = vpack.c.bf16 %v780_v16, %v779_v14 }
  0x84   :  { %v130_v20 = vpop.permute.xlu0 %129  ;;  %v132_v21 = vpop.permute.xlu1 %131 }
  0x85   :  { %v200_v23 = vsel %vm191_vm0, %v43_v18, %v130_v20  ;;  %v201_v25 = vsel %vm191_vm0, %v44_v22, %v132_v21  ;;  %v781_v18 = vld [vmem:[%s2622_s6 + $0x20] sm:$0xff]  ;;  %1802 = vmatprep.subr.bf16.mxu0 %v1801_v15  ;;  %v783_v21 = vld [vmem:[%s2622_s6 + $0x30] sm:$0xff]  ;;  %v784_v22 = vld [vmem:[%s2622_s6 + $0x38] sm:$0xff] }
  0x86   :  { %1511 = vmatmul.mubr.msk.f32.gmra.mrb[6].mxu0 %vm233_vm1, %v199_v19  ;;  %v782_v19 = vld [vmem:[%s2622_s6 + $0x28] sm:$0xff] }
  0x87   :  { %1513 = vmatprep.mubr.msk.f32.mxu0 %vm233_vm1, %v200_v23  ;;  %1804 = vmatpush3.bf16.msra.mxu0 %v1801_v15  ;;  %v1809_v20 = vpack.c.bf16 %v782_v19, %v781_v18  ;;  %v1813_v23 = vpack.c.bf16 %v784_v22, %v783_v21 }
  0x88   :  { %v134_v26 = vpop.permute.xlu0 %133  ;;  %v136_v27 = vpop.permute.xlu1 %135  ;;  %1806 = vmatprep.subr.bf16.mxu0 %v1805_v17 }
  0x89   :  { %v202_v29 = vsel %vm191_vm0, %v45_v24, %v134_v26  ;;  %v203_v31 = vsel %vm191_vm0, %v46_v28, %v136_v27  ;;  %v785_v24 = vld [vmem:[%s2622_s6 + $0x40] sm:$0xff]  ;;  %v787_v27 = vld [vmem:[%s2622_s6 + $0x50] sm:$0xff]  ;;  %v788_v28 = vld [vmem:[%s2622_s6 + $0x58] sm:$0xff] }
  0x8a   :  { %1514 = vmatmul.mubr.msk.f32.gmra.mrb[8].mxu0 %vm233_vm1, %v201_v25  ;;  %v786_v25 = vld [vmem:[%s2622_s6 + $0x48] sm:$0xff] }
  0x8b   :  { %1516 = vmatprep.mubr.msk.f32.mxu0 %vm233_vm1, %v202_v29  ;;  %1808 = vmatpush3.bf16.msra.mxu0 %v1805_v17  ;;  %v1817_v26 = vpack.c.bf16 %v786_v25, %v785_v24  ;;  %v1821_v29 = vpack.c.bf16 %v788_v28, %v787_v27 }
  0x8c   :  { %v138_v32 = vpop.permute.xlu0 %137  ;;  %v140_v33 = vpop.permute.xlu1 %139  ;;  %1810 = vmatprep.subr.bf16.mxu0 %v1809_v20 }
  0x8d   :  { %v204_v35 = vsel %vm191_vm0, %v47_v30, %v138_v32  ;;  %v205_v37 = vsel %vm191_vm0, %v48_v34, %v140_v33  ;;  %v789_v30 = vld [vmem:[%s2622_s6 + $0x60] sm:$0xff] }
  0x8e   :  { %1517 = vmatmul.mubr.msk.f32.gmra.mrb[10].mxu0 %vm233_vm1, %v203_v31  ;;  %v790_v31 = vld [vmem:[%s2622_s6 + $0x68] sm:$0xff]  ;;  %v2341_v33 = vld [vmem:[%s2623_s3] ss:$0 sm:$0xff] }
  0x8f   :  { %1519 = vmatprep.mubr.msk.f32.mxu0 %vm233_vm1, %v204_v35  ;;  %1812 = vmatpush3.bf16.msra.mxu0 %v1809_v20  ;;  %v1825_v32 = vpack.c.bf16 %v790_v31, %v789_v30 }
  0x90   :  { %v142_v38 = vpop.permute.xlu0 %141  ;;  %v144_v39 = vpop.permute.xlu1 %143  ;;  %1814 = vmatprep.subr.bf16.mxu0 %v1813_v23 }
  0x91   :  { %v206_v41 = vsel %vm191_vm0, %v49_v36, %v142_v38  ;;  %v207_v43 = vsel %vm191_vm0, %v50_v40, %v144_v39 }
  0x92   :  { %1520 = vmatmul.mubr.msk.f32.gmra.mrb[12].mxu0 %vm233_vm1, %v205_v37 }
  0x93   :  { %1522 = vmatprep.mubr.msk.f32.mxu0 %vm233_vm1, %v206_v41  ;;  %1816 = vmatpush3.bf16.msra.mxu0 %v1813_v23 }
  0x94   :  { %v146_v44 = vpop.permute.xlu0 %145  ;;  %v148_v45 = vpop.permute.xlu1 %147  ;;  %1818 = vmatprep.subr.bf16.mxu0 %v1817_v26 }
  0x95   :  { %v208_v47 = vsel %vm191_vm0, %v51_v42, %v146_v44  ;;  %v209_v49 = vsel %vm191_vm0, %v52_v46, %v148_v45 }
  0x96   :  { %1523 = vmatmul.mubr.msk.f32.gmra.mrb[14].mxu0 %vm233_vm1, %v207_v43 }
  0x97   :  { %1525 = vmatprep.mubr.msk.f32.mxu0 %vm233_vm1, %v208_v47  ;;  %1820 = vmatpush3.bf16.msra.mxu0 %v1817_v26 }
  0x98   :  { %v150_v50 = vpop.permute.xlu0 %149  ;;  %v152_v51 = vpop.permute.xlu1 %151  ;;  %1822 = vmatprep.subr.bf16.mxu0 %v1821_v29 }
  0x99   :  { %v210_v53 = vsel %vm191_vm0, %v53_v48, %v150_v50  ;;  %v211_v55 = vsel %vm191_vm0, %v54_v52, %v152_v51 }
  0x9a   :  { %1526 = vmatmul.mubr.msk.f32.gmra.mrb[16].mxu0 %vm233_vm1, %v209_v49 }
  0x9b   :  { %1528 = vmatprep.mubr.msk.f32.mxu0 %vm233_vm1, %v210_v53  ;;  %1824 = vmatpush3.bf16.msra.mxu0 %v1821_v29 }
  0x9c   :  { %v154_v56 = vpop.permute.xlu0 %153  ;;  %v156_v57 = vpop.permute.xlu1 %155  ;;  %1826 = vmatprep.subr.bf16.mxu0 %v1825_v32 }
  0x9d   :  { %v212_v59 = vsel %vm191_vm0, %v55_v54, %v154_v56  ;;  %v213_v61 = vsel %vm191_vm0, %v56_v58, %v156_v57 }
  0x9e   :  { %1529 = vmatmul.mubr.msk.f32.gmra.mrb[18].mxu0 %vm233_vm1, %v211_v55 }
  0x9f   :  { %1531 = vmatprep.mubr.msk.f32.mxu0 %vm233_vm1, %v212_v59  ;;  %1828 = vmatpush3.bf16.msra.mxu0 %v1825_v32 }
  0xa0   :  { %v158_v62 = vpop.permute.xlu0 %157  ;;  %v160_v63 = vpop.permute.xlu1 %159 }
  0xa1   :  { %v214_v1 = vsel %vm191_vm0, %v57_v60, %v158_v62  ;;  %v215_v3 = vsel %vm191_vm0, %v58_v0, %v160_v63 }
  0xa2   :  { %1532 = vmatmul.mubr.msk.f32.gmra.mrb[20].mxu0 %vm233_vm1, %v213_v61 }
  0xa3   :  { %1534 = vmatprep.mubr.msk.f32.mxu0 %vm233_vm1, %v214_v1 }
  0xa4   :  { %v162_v4 = vpop.permute.xlu0 %161  ;;  %v164_v5 = vpop.permute.xlu1 %163 }
  0xa5   :  { %v216_v7 = vsel %vm191_vm0, %v59_v2, %v162_v4  ;;  %v217_v8 = vsel %vm191_vm0, %v60_v6, %v164_v5 }
  0xa6   :  { %1535 = vmatmul.mubr.msk.f32.gmra.mrb[22].mxu0 %vm233_vm1, %v215_v3 }
  0xa7   :  { %1537 = vmatprep.mubr.msk.f32.mxu0 %vm233_vm1, %v216_v7 }
  0xaa   :  { %1538 = vmatmul.mubr.msk.f32.gmra.mrb[24].mxu0 %vm233_vm1, %v217_v8 }
 0x14d   :  { %v1503_v34 = vpop.f32.mrb[0].mxu0 }
 0x14e   :  { %v384_v35 = vadd.f32 %v1503_v34, %v2341_v33  ;;  %v378_v36 = vpop.f32.mrb[1].mxu0 }
 0x14f   :  { %v379_v37 = vadd.f32 %v2341_v33, %v378_v36 }
 0x150   :  { %v508_v40 = vmax.f32 %v384_v35, 0.0 }
 0x151   :  { %v1506_v38 = vpop.f32.mrb[2].mxu0  ;;  %v507_v39 = vmax.f32 %v379_v37, 0.0 }
 0x152   :  { %v394_v41 = vadd.f32 %v1506_v38, %v2341_v33  ;;  %v388_v42 = vpop.f32.mrb[3].mxu0 }
 0x153   :  { %v389_v43 = vadd.f32 %v2341_v33, %v388_v42  ;;  %1572 = vmatprep.mubr.f32.mxu1 %v507_v39 }
 0x154   :  { %1573 = vmatmul.mubr.f32.vlgmr.msra.gmra.mrb[0].mxu1 %v508_v40  ;;  %v510_v46 = vmax.f32 %v394_v41, 0.0 }
 0x155   :  { %v509_v44 = vmax.f32 %v389_v43, 0.0  ;;  %v1509_v45 = vpop.f32.mrb[4].mxu0 }
 0x156   :  { %v404_v47 = vadd.f32 %v1509_v45, %v2341_v33  ;;  %v398_v48 = vpop.f32.mrb[5].mxu0 }
 0x157   :  { %v399_v49 = vadd.f32 %v2341_v33, %v398_v48  ;;  %1575 = vmatprep.mubr.f32.mxu1 %v509_v44 }
 0x158   :  { %1576 = vmatmul.mubr.f32.gmra.mrb[2].mxu1 %v510_v46  ;;  %v512_v52 = vmax.f32 %v404_v47, 0.0 }
 0x159   :  { %v511_v50 = vmax.f32 %v399_v49, 0.0  ;;  %v1512_v51 = vpop.f32.mrb[6].mxu0  ;;  %v791_v49 = vld [vmem:[%s2622_s6 + $0x70] sm:$0xff] }
 0x15a   :  { %v414_v53 = vadd.f32 %v1512_v51, %v2341_v33  ;;  %v408_v54 = vpop.f32.mrb[7].mxu0 }
 0x15b   :  { %v409_v55 = vadd.f32 %v2341_v33, %v408_v54  ;;  %1578 = vmatprep.mubr.f32.mxu1 %v511_v50  ;;  %v792_v50 = vld [vmem:[%s2622_s6 + $0x78] sm:$0xff] }
 0x15c   :  { %1579 = vmatmul.mubr.f32.gmra.mrb[4].mxu1 %v512_v52  ;;  %v514_v58 = vmax.f32 %v414_v53, 0.0  ;;  %v1829_v51 = vpack.c.bf16 %v792_v50, %v791_v49  ;;  %v1022_v52 = vld [vmem:[%s2624_s8 + $0x8] sm:$0xff]  ;;  %v1023_v53 = vld [vmem:[%s2624_s8 + $0x10] sm:$0xff] }
 0x15d   :  { %v513_v56 = vmax.f32 %v409_v55, 0.0  ;;  %v1515_v57 = vpop.f32.mrb[8].mxu0  ;;  %v1024_v55 = vld [vmem:[%s2624_s8 + $0x18] sm:$0xff] }
 0x15e   :  { %v424_v59 = vadd.f32 %v1515_v57, %v2341_v33  ;;  %v418_v60 = vpop.f32.mrb[9].mxu0  ;;  %1830 = vmatprep.subr.bf16.mxu0 %v1829_v51  ;;  %v1025_v57 = vld [vmem:[%s2624_s8 + $0x20] sm:$0xff] }
 0x15f   :  { %v419_v61 = vadd.f32 %v2341_v33, %v418_v60  ;;  %1581 = vmatprep.mubr.f32.mxu1 %v513_v56  ;;  %1832 = vmatpush3.bf16.msra.mxu0 %v1829_v51  ;;  %v1837_v56 = vpack.c.bf16 %v1024_v55, %v1023_v53  ;;  %v1027_v60 = vld [vmem:[%s2624_s8 + $0x30] sm:$0xff] }
 0x160   :  { %1582 = vmatmul.mubr.f32.gmra.mrb[6].mxu1 %v514_v58  ;;  %v516_v0 = vmax.f32 %v424_v59, 0.0  ;;  %v1026_v58 = vld [vmem:[%s2624_s8 + $0x28] sm:$0xff] }
 0x161   :  { %v515_v62 = vmax.f32 %v419_v61, 0.0  ;;  %v1518_v63 = vpop.f32.mrb[10].mxu0  ;;  %v1841_v59 = vpack.c.bf16 %v1026_v58, %v1025_v57  ;;  %v1028_v61 = vld [vmem:[%s2624_s8 + $0x38] sm:$0xff] }
 0x162   :  { %v434_v1 = vadd.f32 %v1518_v63, %v2341_v33  ;;  %v428_v2 = vpop.f32.mrb[11].mxu0  ;;  %v1029_v63 = vld [vmem:[%s2624_s8 + $0x40] sm:$0xff] }
 0x163   :  { %v429_v3 = vadd.f32 %v2341_v33, %v428_v2  ;;  %1584 = vmatprep.mubr.f32.mxu1 %v515_v62  ;;  %v2399_v62 = vpack.c.bf16 %v1028_v61, %v1027_v60  ;;  %v1031_v2 = vld [vmem:[%s2624_s8 + $0x50] sm:$0xff] }
 0x164   :  { %1585 = vmatmul.mubr.f32.gmra.mrb[8].mxu1 %v516_v0  ;;  %v518_v6 = vmax.f32 %v434_v1, 0.0  ;;  %v1030_v0 = vld [vmem:[%s2624_s8 + $0x48] sm:$0xff] }
 0x165   :  { %v517_v4 = vmax.f32 %v429_v3, 0.0  ;;  %v1521_v5 = vpop.f32.mrb[12].mxu0  ;;  %v2408_v1 = vpack.c.bf16 %v1030_v0, %v1029_v63  ;;  %v1032_v3 = vld [vmem:[%s2624_s8 + $0x58] sm:$0xff] }
 0x166   :  { %v444_v7 = vadd.f32 %v1521_v5, %v2341_v33  ;;  %v438_v8 = vpop.f32.mrb[13].mxu0  ;;  %v1033_v5 = vld [vmem:[%s2624_s8 + $0x60] sm:$0xff] }
 0x167   :  { %v439_v9 = vadd.f32 %v2341_v33, %v438_v8  ;;  %1587 = vmatprep.mubr.f32.mxu1 %v517_v4  ;;  %v2418_v4 = vpack.c.bf16 %v1032_v3, %v1031_v2  ;;  %v2436_v8 = vld [vmem:[%s2625_s5] ss:$0 sm:$0xff] }
 0x168   :  { %1588 = vmatmul.mubr.f32.gmra.mrb[10].mxu1 %v518_v6  ;;  %v520_v12 = vmax.f32 %v444_v7, 0.0  ;;  %v1034_v6 = vld [vmem:[%s2624_s8 + $0x68] sm:$0xff] }
 0x169   :  { %v519_v10 = vmax.f32 %v439_v9, 0.0  ;;  %v1524_v11 = vpop.f32.mrb[14].mxu0  ;;  %v2428_v7 = vpack.c.bf16 %v1034_v6, %v1033_v5 }
 0x16a   :  { %v454_v13 = vadd.f32 %v1524_v11, %v2341_v33  ;;  %v448_v14 = vpop.f32.mrb[15].mxu0 }
 0x16b   :  { %v449_v15 = vadd.f32 %v2341_v33, %v448_v14  ;;  %1590 = vmatprep.mubr.f32.mxu1 %v519_v10 }
 0x16c   :  { %1591 = vmatmul.mubr.f32.gmra.mrb[12].mxu1 %v520_v12  ;;  %v522_v18 = vmax.f32 %v454_v13, 0.0 }
 0x16d   :  { %v521_v16 = vmax.f32 %v449_v15, 0.0  ;;  %v1527_v17 = vpop.f32.mrb[16].mxu0 }
 0x16e   :  { %v464_v19 = vadd.f32 %v1527_v17, %v2341_v33  ;;  %v458_v20 = vpop.f32.mrb[17].mxu0 }
 0x16f   :  { %v459_v21 = vadd.f32 %v2341_v33, %v458_v20  ;;  %1593 = vmatprep.mubr.f32.mxu1 %v521_v16 }
 0x170   :  { %1594 = vmatmul.mubr.f32.gmra.mrb[14].mxu1 %v522_v18  ;;  %v524_v24 = vmax.f32 %v464_v19, 0.0 }
 0x171   :  { %v523_v22 = vmax.f32 %v459_v21, 0.0  ;;  %v1530_v23 = vpop.f32.mrb[18].mxu0 }
 0x172   :  { %v474_v25 = vadd.f32 %v1530_v23, %v2341_v33  ;;  %v468_v26 = vpop.f32.mrb[19].mxu0 }
 0x173   :  { %v469_v27 = vadd.f32 %v2341_v33, %v468_v26  ;;  %1596 = vmatprep.mubr.f32.mxu1 %v523_v22 }
 0x174   :  { %1597 = vmatmul.mubr.f32.gmra.mrb[16].mxu1 %v524_v24  ;;  %v526_v30 = vmax.f32 %v474_v25, 0.0 }
 0x175   :  { %v525_v28 = vmax.f32 %v469_v27, 0.0  ;;  %v1533_v29 = vpop.f32.mrb[20].mxu0 }
 0x176   :  { %v484_v31 = vadd.f32 %v1533_v29, %v2341_v33  ;;  %v478_v32 = vpop.f32.mrb[21].mxu0 }
 0x177   :  { %v479_v34 = vadd.f32 %v2341_v33, %v478_v32  ;;  %1599 = vmatprep.mubr.f32.mxu1 %v525_v28 }
 0x178   :  { %1600 = vmatmul.mubr.f32.gmra.mrb[18].mxu1 %v526_v30  ;;  %v528_v37 = vmax.f32 %v484_v31, 0.0 }
 0x179   :  { %v527_v35 = vmax.f32 %v479_v34, 0.0  ;;  %v1536_v36 = vpop.f32.mrb[22].mxu0 }
 0x17a   :  { %v494_v38 = vadd.f32 %v1536_v36, %v2341_v33  ;;  %v488_v39 = vpop.f32.mrb[23].mxu0 }
 0x17b   :  { %v489_v40 = vadd.f32 %v2341_v33, %v488_v39  ;;  %1602 = vmatprep.mubr.f32.mxu1 %v527_v35 }
 0x17c   :  { %1603 = vmatmul.mubr.f32.gmra.mrb[20].mxu1 %v528_v37  ;;  %v530_v43 = vmax.f32 %v494_v38, 0.0 }
 0x17d   :  { %v529_v41 = vmax.f32 %v489_v40, 0.0  ;;  %v1539_v42 = vpop.f32.mrb[24].mxu0 }
 0x17e   :  { %v504_v44 = vadd.f32 %v1539_v42, %v2341_v33  ;;  %v498_v45 = vpop.f32.mrb[25].mxu0 }
 0x17f   :  { %v499_v46 = vadd.f32 %v2341_v33, %v498_v45  ;;  %1605 = vmatprep.mubr.f32.mxu1 %v529_v41  ;;  %v1021_v33 = vld [vmem:[%s2624_s8] sm:$0xff] }
 0x180   :  { %1606 = vmatmul.mubr.f32.gmra.mrb[22].mxu1 %v530_v43  ;;  %v532_v48 = vmax.f32 %v504_v44, 0.0  ;;  %v1833_v54 = vpack.c.bf16 %v1022_v52, %v1021_v33 }
 0x181   :  { %v531_v47 = vmax.f32 %v499_v46, 0.0 }
 0x182   :  { %1865 = vmatprep.subr.bf16.mxu1 %v1833_v54  ;;  %1834 = vmatprep.subr.bf16.mxu0 %v1833_v54 }
 0x183   :  { %1608 = vmatprep.mubr.f32.mxu1 %v531_v47  ;;  %1873 = vmatpush3.bf16.msra.mxu1 %v1833_v54 }
 0x184   :  { %1609 = vmatmul.mubr.f32.gmra.mrb[24].mxu1 %v532_v48  ;;  %1866 = vmatprep.subr.bf16.mxu1 %v1837_v56 }
 0x187   :  { %1874 = vmatpush3.bf16.msra.mxu1 %v1837_v56 }
 0x188   :  { %1867 = vmatprep.subr.bf16.mxu1 %v1841_v59 }
 0x18b   :  { %1875 = vmatpush3.bf16.msra.mxu1 %v1841_v59 }
 0x18c   :  { %1868 = vmatprep.subr.bf16.mxu1 %v2399_v62 }
 0x18f   :  { %1876 = vmatpush3.bf16.msra.mxu1 %v2399_v62 }
 0x190   :  { %1869 = vmatprep.subr.bf16.mxu1 %v2408_v1 }
 0x193   :  { %1877 = vmatpush3.bf16.msra.mxu1 %v2408_v1 }
 0x194   :  { %1870 = vmatprep.subr.bf16.mxu1 %v2418_v4 }
 0x197   :  { %1878 = vmatpush3.bf16.msra.mxu1 %v2418_v4 }
 0x198   :  { %1871 = vmatprep.subr.bf16.mxu1 %v2428_v7 }
 0x19b   :  { %1879 = vmatpush3.bf16.msra.mxu1 %v2428_v7 }
 0x227   :  { %v1574_v9 = vpop.f32.mrb[0].mxu1 }
 0x228   :  { %v628_v10 = vadd.f32 %v1574_v9, %v2436_v8  ;;  %v622_v11 = vpop.f32.mrb[1].mxu1 }
 0x229   :  { %v623_v12 = vadd.f32 %v2436_v8, %v622_v11 }
 0x22a   :  { %v752_v15 = vmax.f32 %v628_v10, 0.0 }
 0x22b   :  { %v751_v13 = vmax.f32 %v623_v12, 0.0  ;;  %v1577_v14 = vpop.f32.mrb[2].mxu1 }
 0x22c   :  { %v638_v16 = vadd.f32 %v1577_v14, %v2436_v8  ;;  %v632_v17 = vpop.f32.mrb[3].mxu1 }
 0x22d   :  { %v633_v18 = vadd.f32 %v2436_v8, %v632_v17  ;;  %1643 = vmatprep.mubr.f32.mxu0 %v751_v13 }
 0x22e   :  { %1644 = vmatmul.mubr.f32.vlgmr.msra.gmra.mrb[26].mxu0 %v752_v15  ;;  %v754_v21 = vmax.f32 %v638_v16, 0.0 }
 0x22f   :  { %v753_v19 = vmax.f32 %v633_v18, 0.0  ;;  %v1580_v20 = vpop.f32.mrb[4].mxu1  ;;  %1836 = vmatpush3.bf16.msra.mxu0 %v1833_v54 }
 0x230   :  { %v648_v22 = vadd.f32 %v1580_v20, %v2436_v8  ;;  %v642_v23 = vpop.f32.mrb[5].mxu1  ;;  %1838 = vmatprep.subr.bf16.mxu0 %v1837_v56 }
 0x231   :  { %v643_v24 = vadd.f32 %v2436_v8, %v642_v23  ;;  %1646 = vmatprep.mubr.f32.mxu0 %v753_v19 }
 0x232   :  { %1647 = vmatmul.mubr.f32.gmra.mrb[28].mxu0 %v754_v21  ;;  %v756_v27 = vmax.f32 %v648_v22, 0.0 }
 0x233   :  { %v755_v25 = vmax.f32 %v643_v24, 0.0  ;;  %v1583_v26 = vpop.f32.mrb[6].mxu1  ;;  %1840 = vmatpush3.bf16.msra.mxu0 %v1837_v56  ;;  %v1035_v24 = vld [vmem:[%s2624_s8 + $0x70] sm:$0xff] }
 0x234   :  { %v658_v28 = vadd.f32 %v1583_v26, %v2436_v8  ;;  %v652_v29 = vpop.f32.mrb[7].mxu1  ;;  %1842 = vmatprep.subr.bf16.mxu0 %v1841_v59 }
 0x235   :  { %v653_v30 = vadd.f32 %v2436_v8, %v652_v29  ;;  %1649 = vmatprep.mubr.f32.mxu0 %v755_v25  ;;  %v1036_v25 = vld [vmem:[%s2624_s8 + $0x78] sm:$0xff] }
 0x236   :  { %1650 = vmatmul.mubr.f32.gmra.mrb[30].mxu0 %v756_v27  ;;  %v758_v34 = vmax.f32 %v658_v28, 0.0  ;;  %v1861_v26 = vpack.c.bf16 %v1036_v25, %v1035_v24 }
 0x237   :  { %v757_v31 = vmax.f32 %v653_v30, 0.0  ;;  %v1586_v32 = vpop.f32.mrb[8].mxu1  ;;  %1844 = vmatpush3.bf16.msra.mxu0 %v1841_v59 }
 0x238   :  { %v668_v35 = vadd.f32 %v1586_v32, %v2436_v8  ;;  %v662_v36 = vpop.f32.mrb[9].mxu1  ;;  %1846 = vmatprep.subr.bf16.mxu0 %v2399_v62  ;;  %1872 = vmatprep.subr.bf16.mxu1 %v1861_v26 }
 0x239   :  { %v663_v37 = vadd.f32 %v2436_v8, %v662_v36  ;;  %1652 = vmatprep.mubr.f32.mxu0 %v757_v31  ;;  %1880 = vmatpush3.bf16.msra.mxu1 %v1861_v26 }
 0x23a   :  { %1653 = vmatmul.mubr.f32.gmra.mrb[32].mxu0 %v758_v34  ;;  %v760_v40 = vmax.f32 %v668_v35, 0.0 }
 0x23b   :  { %v759_v38 = vmax.f32 %v663_v37, 0.0  ;;  %v1589_v39 = vpop.f32.mrb[10].mxu1  ;;  %1848 = vmatpush3.bf16.msra.mxu0 %v2399_v62 }
 0x23c   :  { %v678_v41 = vadd.f32 %v1589_v39, %v2436_v8  ;;  %v672_v42 = vpop.f32.mrb[11].mxu1  ;;  %1850 = vmatprep.subr.bf16.mxu0 %v2408_v1 }
 0x23d   :  { %v673_v43 = vadd.f32 %v2436_v8, %v672_v42  ;;  %1655 = vmatprep.mubr.f32.mxu0 %v759_v38 }
 0x23e   :  { %1656 = vmatmul.mubr.f32.gmra.mrb[34].mxu0 %v760_v40  ;;  %v762_v46 = vmax.f32 %v678_v41, 0.0 }
 0x23f   :  { %v761_v44 = vmax.f32 %v673_v43, 0.0  ;;  %v1592_v45 = vpop.f32.mrb[12].mxu1  ;;  %1852 = vmatpush3.bf16.msra.mxu0 %v2408_v1 }
 0x240   :  { %v688_v47 = vadd.f32 %v1592_v45, %v2436_v8  ;;  %v682_v48 = vpop.f32.mrb[13].mxu1  ;;  %1854 = vmatprep.subr.bf16.mxu0 %v2418_v4 }
 0x241   :  { %v683_v49 = vadd.f32 %v2436_v8, %v682_v48  ;;  %1658 = vmatprep.mubr.f32.mxu0 %v761_v44 }
 0x242   :  { %1659 = vmatmul.mubr.f32.gmra.mrb[36].mxu0 %v762_v46  ;;  %v764_v33 = vmax.f32 %v688_v47, 0.0 }
 0x243   :  { %v763_v50 = vmax.f32 %v683_v49, 0.0  ;;  %v1595_v51 = vpop.f32.mrb[14].mxu1  ;;  %1856 = vmatpush3.bf16.msra.mxu0 %v2418_v4 }
 0x244   :  { %v698_v52 = vadd.f32 %v1595_v51, %v2436_v8  ;;  %v692_v53 = vpop.f32.mrb[15].mxu1  ;;  %1858 = vmatprep.subr.bf16.mxu0 %v2428_v7 }
 0x245   :  { %v693_v54 = vadd.f32 %v2436_v8, %v692_v53  ;;  %1661 = vmatprep.mubr.f32.mxu0 %v763_v50 }
 0x246   :  { %1662 = vmatmul.mubr.f32.gmra.mrb[38].mxu0 %v764_v33  ;;  %v766_v57 = vmax.f32 %v698_v52, 0.0 }
 0x247   :  { %v765_v55 = vmax.f32 %v693_v54, 0.0  ;;  %v1598_v56 = vpop.f32.mrb[16].mxu1  ;;  %1860 = vmatpush3.bf16.msra.mxu0 %v2428_v7 }
 0x248   :  { %v708_v58 = vadd.f32 %v1598_v56, %v2436_v8  ;;  %v702_v59 = vpop.f32.mrb[17].mxu1  ;;  %1862 = vmatprep.subr.bf16.mxu0 %v1861_v26 }
 0x249   :  { %v703_v60 = vadd.f32 %v2436_v8, %v702_v59  ;;  %1664 = vmatprep.mubr.f32.mxu0 %v765_v55 }
 0x24a   :  { %1665 = vmatmul.mubr.f32.gmra.mrb[40].mxu0 %v766_v57  ;;  %v768_v63 = vmax.f32 %v708_v58, 0.0 }
 0x24b   :  { %v767_v61 = vmax.f32 %v703_v60, 0.0  ;;  %v1601_v62 = vpop.f32.mrb[18].mxu1  ;;  %1864 = vmatpush3.bf16.msra.mxu0 %v1861_v26 }
 0x24c   :  { %v718_v0 = vadd.f32 %v1601_v62, %v2436_v8  ;;  %v712_v1 = vpop.f32.mrb[19].mxu1 }
 0x24d   :  { %v713_v2 = vadd.f32 %v2436_v8, %v712_v1  ;;  %1667 = vmatprep.mubr.f32.mxu0 %v767_v61 }
 0x24e   :  { %1668 = vmatmul.mubr.f32.gmra.mrb[42].mxu0 %v768_v63  ;;  %v770_v5 = vmax.f32 %v718_v0, 0.0 }
 0x24f   :  { %v769_v3 = vmax.f32 %v713_v2, 0.0  ;;  %v1604_v4 = vpop.f32.mrb[20].mxu1 }
 0x250   :  { %v728_v6 = vadd.f32 %v1604_v4, %v2436_v8  ;;  %v722_v7 = vpop.f32.mrb[21].mxu1 }
 0x251   :  { %v723_v9 = vadd.f32 %v2436_v8, %v722_v7  ;;  %1670 = vmatprep.mubr.f32.mxu0 %v769_v3 }
 0x252   :  { %1671 = vmatmul.mubr.f32.gmra.mrb[44].mxu0 %v770_v5  ;;  %v772_v12 = vmax.f32 %v728_v6, 0.0 }
 0x253   :  { %v771_v10 = vmax.f32 %v723_v9, 0.0  ;;  %v1607_v11 = vpop.f32.mrb[22].mxu1 }
 0x254   :  { %v738_v13 = vadd.f32 %v1607_v11, %v2436_v8  ;;  %v732_v14 = vpop.f32.mrb[23].mxu1 }
 0x255   :  { %v733_v15 = vadd.f32 %v2436_v8, %v732_v14  ;;  %1673 = vmatprep.mubr.f32.mxu0 %v771_v10 }
 0x256   :  { %1674 = vmatmul.mubr.f32.gmra.mrb[46].mxu0 %v772_v12  ;;  %v774_v18 = vmax.f32 %v738_v13, 0.0 }
 0x257   :  { %v773_v16 = vmax.f32 %v733_v15, 0.0  ;;  %v1610_v17 = vpop.f32.mrb[24].mxu1 }
 0x258   :  { %v748_v19 = vadd.f32 %v1610_v17, %v2436_v8  ;;  %v742_v20 = vpop.f32.mrb[25].mxu1 }
 0x259   :  { %v743_v21 = vadd.f32 %v2436_v8, %v742_v20  ;;  %1676 = vmatprep.mubr.f32.mxu0 %v773_v16  ;;  %v2481_v8 = vld [vmem:[%s2626_s7] ss:$0 sm:$0xff] }
 0x25a   :  { %1677 = vmatmul.mubr.f32.gmra.mrb[48].mxu0 %v774_v18  ;;  %v776_v23 = vmax.f32 %v748_v19, 0.0 }
 0x25b   :  { %v775_v22 = vmax.f32 %v743_v21, 0.0 }
 0x25d   :  { %1679 = vmatprep.mubr.f32.mxu0 %v775_v22 }
 0x25e   :  { %1680 = vmatmul.mubr.f32.gmra.mrb[50].mxu0 %v776_v23 }
 0x301   :  { %v1645_v27 = vpop.f32.mrb[26].mxu0 }
 0x302   :  { %v872_v28 = vadd.f32 %v1645_v27, %v2481_v8  ;;  %v866_v29 = vpop.f32.mrb[27].mxu0 }
 0x303   :  { %v867_v30 = vadd.f32 %v2481_v8, %v866_v29 }
 0x304   :  { %v996_v34 = vmax.f32 %v872_v28, 0.0 }
 0x305   :  { %v995_v31 = vmax.f32 %v867_v30, 0.0  ;;  %v1648_v32 = vpop.f32.mrb[28].mxu0 }
 0x306   :  { %v882_v35 = vadd.f32 %v1648_v32, %v2481_v8  ;;  %v876_v36 = vpop.f32.mrb[29].mxu0 }
 0x307   :  { %v877_v37 = vadd.f32 %v2481_v8, %v876_v36  ;;  %1714 = vmatprep.mubr.f32.mxu0 %v995_v31 }
 0x308   :  { %1715 = vmatmul.mubr.f32.vlgmr.msra.gmra.mrb[52].mxu0 %v996_v34  ;;  %v998_v40 = vmax.f32 %v882_v35, 0.0 }
 0x309   :  { %v997_v38 = vmax.f32 %v877_v37, 0.0  ;;  %v1651_v39 = vpop.f32.mrb[30].mxu0 }
 0x30a   :  { %v892_v41 = vadd.f32 %v1651_v39, %v2481_v8  ;;  %v886_v42 = vpop.f32.mrb[31].mxu0 }
 0x30b   :  { %v887_v43 = vadd.f32 %v2481_v8, %v886_v42  ;;  %1717 = vmatprep.mubr.f32.mxu0 %v997_v38 }
 0x30c   :  { %1718 = vmatmul.mubr.f32.gmra.mrb[54].mxu0 %v998_v40  ;;  %v1000_v46 = vmax.f32 %v892_v41, 0.0 }
 0x30d   :  { %v999_v44 = vmax.f32 %v887_v43, 0.0  ;;  %v1654_v45 = vpop.f32.mrb[32].mxu0  ;;  %v2512_v43 = vld [vmem:[%s2627_s9] ss:$0 sm:$0xff] }
 0x30e   :  { %v902_v47 = vadd.f32 %v1654_v45, %v2481_v8  ;;  %v896_v48 = vpop.f32.mrb[33].mxu0 }
 0x30f   :  { %v897_v49 = vadd.f32 %v2481_v8, %v896_v48  ;;  %1720 = vmatprep.mubr.f32.mxu1 %v999_v44 }
 0x310   :  { %1721 = vmatmul.mubr.f32.vlgmr.msra.gmra.mrb[26].mxu1 %v1000_v46  ;;  %v1002_v33 = vmax.f32 %v902_v47, 0.0 }
 0x311   :  { %v1001_v50 = vmax.f32 %v897_v49, 0.0  ;;  %v1657_v51 = vpop.f32.mrb[34].mxu0 }
 0x312   :  { %v912_v52 = vadd.f32 %v1657_v51, %v2481_v8  ;;  %v906_v53 = vpop.f32.mrb[35].mxu0 }
 0x313   :  { %v907_v54 = vadd.f32 %v2481_v8, %v906_v53  ;;  %1723 = vmatprep.mubr.f32.mxu1 %v1001_v50 }
 0x314   :  { %1724 = vmatmul.mubr.f32.gmra.mrb[28].mxu1 %v1002_v33  ;;  %v1004_v57 = vmax.f32 %v912_v52, 0.0 }
 0x315   :  { %v1003_v55 = vmax.f32 %v907_v54, 0.0  ;;  %v1660_v56 = vpop.f32.mrb[36].mxu0 }
 0x316   :  { %v922_v58 = vadd.f32 %v1660_v56, %v2481_v8  ;;  %v916_v59 = vpop.f32.mrb[37].mxu0 }
 0x317   :  { %v917_v60 = vadd.f32 %v2481_v8, %v916_v59  ;;  %1726 = vmatprep.mubr.f32.mxu1 %v1003_v55 }
 0x318   :  { %1727 = vmatmul.mubr.f32.gmra.mrb[30].mxu1 %v1004_v57  ;;  %v1006_v63 = vmax.f32 %v922_v58, 0.0 }
 0x319   :  { %v1005_v61 = vmax.f32 %v917_v60, 0.0  ;;  %v1663_v62 = vpop.f32.mrb[38].mxu0 }
 0x31a   :  { %v932_v0 = vadd.f32 %v1663_v62, %v2481_v8  ;;  %v926_v1 = vpop.f32.mrb[39].mxu0 }
 0x31b   :  { %v927_v2 = vadd.f32 %v2481_v8, %v926_v1  ;;  %1729 = vmatprep.mubr.f32.mxu1 %v1005_v61 }
 0x31c   :  { %1730 = vmatmul.mubr.f32.gmra.mrb[32].mxu1 %v1006_v63  ;;  %v1008_v5 = vmax.f32 %v932_v0, 0.0 }
 0x31d   :  { %v1007_v3 = vmax.f32 %v927_v2, 0.0  ;;  %v1666_v4 = vpop.f32.mrb[40].mxu0 }
 0x31e   :  { %v942_v6 = vadd.f32 %v1666_v4, %v2481_v8  ;;  %v936_v7 = vpop.f32.mrb[41].mxu0 }
 0x31f   :  { %v937_v9 = vadd.f32 %v2481_v8, %v936_v7  ;;  %1732 = vmatprep.mubr.f32.mxu1 %v1007_v3 }
 0x320   :  { %1733 = vmatmul.mubr.f32.gmra.mrb[34].mxu1 %v1008_v5  ;;  %v1010_v12 = vmax.f32 %v942_v6, 0.0 }
 0x321   :  { %v1009_v10 = vmax.f32 %v937_v9, 0.0  ;;  %v1669_v11 = vpop.f32.mrb[42].mxu0 }
 0x322   :  { %v952_v13 = vadd.f32 %v1669_v11, %v2481_v8  ;;  %v946_v14 = vpop.f32.mrb[43].mxu0 }
 0x323   :  { %v947_v15 = vadd.f32 %v2481_v8, %v946_v14  ;;  %1735 = vmatprep.mubr.f32.mxu1 %v1009_v10 }
 0x324   :  { %1736 = vmatmul.mubr.f32.gmra.mrb[36].mxu1 %v1010_v12  ;;  %v1012_v18 = vmax.f32 %v952_v13, 0.0 }
 0x325   :  { %v1011_v16 = vmax.f32 %v947_v15, 0.0  ;;  %v1672_v17 = vpop.f32.mrb[44].mxu0 }
 0x326   :  { %v962_v19 = vadd.f32 %v1672_v17, %v2481_v8  ;;  %v956_v20 = vpop.f32.mrb[45].mxu0 }
 0x327   :  { %v957_v21 = vadd.f32 %v2481_v8, %v956_v20  ;;  %1738 = vmatprep.mubr.f32.mxu1 %v1011_v16 }
 0x328   :  { %1739 = vmatmul.mubr.f32.gmra.mrb[38].mxu1 %v1012_v18  ;;  %v1014_v24 = vmax.f32 %v962_v19, 0.0 }
 0x329   :  { %v1013_v22 = vmax.f32 %v957_v21, 0.0  ;;  %v1675_v23 = vpop.f32.mrb[46].mxu0 }
 0x32a   :  { %v972_v25 = vadd.f32 %v1675_v23, %v2481_v8  ;;  %v966_v26 = vpop.f32.mrb[47].mxu0 }
 0x32b   :  { %v967_v27 = vadd.f32 %v2481_v8, %v966_v26  ;;  %1741 = vmatprep.mubr.f32.mxu1 %v1013_v22 }
 0x32c   :  { %1742 = vmatmul.mubr.f32.gmra.mrb[40].mxu1 %v1014_v24  ;;  %v1016_v30 = vmax.f32 %v972_v25, 0.0 }
 0x32d   :  { %v1015_v28 = vmax.f32 %v967_v27, 0.0  ;;  %v1678_v29 = vpop.f32.mrb[48].mxu0 }
 0x32e   :  { %v982_v31 = vadd.f32 %v1678_v29, %v2481_v8  ;;  %v976_v32 = vpop.f32.mrb[49].mxu0 }
 0x32f   :  { %v977_v34 = vadd.f32 %v2481_v8, %v976_v32  ;;  %1744 = vmatprep.mubr.f32.mxu1 %v1015_v28 }
 0x330   :  { %1745 = vmatmul.mubr.f32.gmra.mrb[42].mxu1 %v1016_v30  ;;  %v1018_v37 = vmax.f32 %v982_v31, 0.0 }
 0x331   :  { %v1017_v35 = vmax.f32 %v977_v34, 0.0  ;;  %v1681_v36 = vpop.f32.mrb[50].mxu0 }
 0x332   :  { %v992_v38 = vadd.f32 %v1681_v36, %v2481_v8  ;;  %v986_v39 = vpop.f32.mrb[51].mxu0 }
 0x333   :  { %v987_v40 = vadd.f32 %v2481_v8, %v986_v39  ;;  %1747 = vmatprep.mubr.f32.mxu1 %v1017_v35 }
 0x334   :  { %1748 = vmatmul.mubr.f32.gmra.mrb[44].mxu1 %v1018_v37  ;;  %v1020_v42 = vmax.f32 %v992_v38, 0.0 }
 0x335   :  { %v1019_v41 = vmax.f32 %v987_v40, 0.0 }
 0x337   :  { %1750 = vmatprep.mubr.f32.mxu1 %v1019_v41 }
 0x338   :  { %1751 = vmatmul.mubr.f32.gmra.mrb[46].mxu1 %v1020_v42 }
 0x3db   :  { %v1716_v44 = vpop.f32.mrb[52].mxu0 }
 0x3dc   :  { %v1116_v45 = vadd.f32 %v1716_v44, %v2512_v43  ;;  %v1110_v46 = vpop.f32.mrb[53].mxu0 }
 0x3dd   :  { %v1111_v47 = vadd.f32 %v2512_v43, %v1110_v46 }
 0x3de   :  { %1882 = vtanh.f32 %v1116_v45 }
 0x3df   :  { %1884 = vtanh.f32 %v1111_v47  ;;  %v1719_v8 = vpop.f32.mrb[54].mxu0 }
 0x3e0   :  { %v1126_v48 = vadd.f32 %v1719_v8, %v2512_v43  ;;  %v1120_v49 = vpop.f32.mrb[55].mxu0 }
 0x3e1   :  { %v1121_v50 = vadd.f32 %v2512_v43, %v1120_v49 }
 0x3e2   :  { %1886 = vtanh.f32 %v1126_v48 }
 0x3e3   :  { %1888 = vtanh.f32 %v1121_v50  ;;  %v1722_v51 = vpop.f32.mrb[26].mxu1 }
 0x3e4   :  { %v1136_v33 = vadd.f32 %v1722_v51, %v2512_v43  ;;  %v1130_v52 = vpop.f32.mrb[27].mxu1 }
 0x3e5   :  { %v1131_v53 = vadd.f32 %v2512_v43, %v1130_v52 }
 0x3e6   :  { %1890 = vtanh.f32 %v1136_v33 }
 0x3e7   :  { %1892 = vtanh.f32 %v1131_v53  ;;  %v1725_v54 = vpop.f32.mrb[28].mxu1 }
 0x3e8   :  { %v1883_v55 = vpop.eup %1882  ;;  %v1146_v56 = vadd.f32 %v1725_v54, %v2512_v43  ;;  %v1140_v57 = vpop.f32.mrb[29].mxu1 }
 0x3e9   :  { %v1885_v58 = vpop.eup %1884  ;;  %1266 = vst [vmem:[%s2628_s10 + $0x8] sm:$0xff] %v1883_v55  ;;  %v1141_v59 = vadd.f32 %v2512_v43, %v1140_v57 }
 0x3ea   :  { %1265 = vst [vmem:[%s2628_s10] sm:$0xff] %v1885_v58  ;;  %1894 = vtanh.f32 %v1146_v56 }
 0x3eb   :  { %1896 = vtanh.f32 %v1141_v59  ;;  %v1728_v60 = vpop.f32.mrb[30].mxu1 }
 0x3ec   :  { %v1887_v61 = vpop.eup %1886  ;;  %v1156_v62 = vadd.f32 %v1728_v60, %v2512_v43  ;;  %v1150_v63 = vpop.f32.mrb[31].mxu1 }
 0x3ed   :  { %v1889_v0 = vpop.eup %1888  ;;  %1268 = vst [vmem:[%s2628_s10 + $0x18] sm:$0xff] %v1887_v61  ;;  %v1151_v1 = vadd.f32 %v2512_v43, %v1150_v63 }
 0x3ee   :  { %1267 = vst [vmem:[%s2628_s10 + $0x10] sm:$0xff] %v1889_v0  ;;  %1898 = vtanh.f32 %v1156_v62 }
 0x3ef   :  { %1900 = vtanh.f32 %v1151_v1  ;;  %v1731_v2 = vpop.f32.mrb[32].mxu1 }
 0x3f0   :  { %v1891_v3 = vpop.eup %1890  ;;  %v1166_v4 = vadd.f32 %v1731_v2, %v2512_v43  ;;  %v1160_v5 = vpop.f32.mrb[33].mxu1 }
 0x3f1   :  { %v1893_v6 = vpop.eup %1892  ;;  %1270 = vst [vmem:[%s2628_s10 + $0x28] sm:$0xff] %v1891_v3  ;;  %v1161_v7 = vadd.f32 %v2512_v43, %v1160_v5 }
 0x3f2   :  { %1269 = vst [vmem:[%s2628_s10 + $0x20] sm:$0xff] %v1893_v6  ;;  %1902 = vtanh.f32 %v1166_v4 }
 0x3f3   :  { %1904 = vtanh.f32 %v1161_v7  ;;  %v1734_v9 = vpop.f32.mrb[34].mxu1 }
 0x3f4   :  { %v1895_v10 = vpop.eup %1894  ;;  %v1176_v11 = vadd.f32 %v1734_v9, %v2512_v43  ;;  %v1170_v12 = vpop.f32.mrb[35].mxu1 }
 0x3f5   :  { %v1897_v13 = vpop.eup %1896  ;;  %1272 = vst [vmem:[%s2628_s10 + $0x38] sm:$0xff] %v1895_v10  ;;  %v1171_v14 = vadd.f32 %v2512_v43, %v1170_v12 }
 0x3f6   :  { %1271 = vst [vmem:[%s2628_s10 + $0x30] sm:$0xff] %v1897_v13  ;;  %1906 = vtanh.f32 %v1176_v11 }
 0x3f7   :  { %1908 = vtanh.f32 %v1171_v14  ;;  %v1737_v15 = vpop.f32.mrb[36].mxu1 }
 0x3f8   :  { %v1899_v16 = vpop.eup %1898  ;;  %v1186_v17 = vadd.f32 %v1737_v15, %v2512_v43  ;;  %v1180_v18 = vpop.f32.mrb[37].mxu1 }
 0x3f9   :  { %v1901_v19 = vpop.eup %1900  ;;  %1274 = vst [vmem:[%s2628_s10 + $0x48] sm:$0xff] %v1899_v16  ;;  %v1181_v20 = vadd.f32 %v2512_v43, %v1180_v18 }
 0x3fa   :  { %1273 = vst [vmem:[%s2628_s10 + $0x40] sm:$0xff] %v1901_v19  ;;  %1910 = vtanh.f32 %v1186_v17 }
 0x3fb   :  { %1912 = vtanh.f32 %v1181_v20  ;;  %v1740_v21 = vpop.f32.mrb[38].mxu1 }
 0x3fc   :  { %v1903_v22 = vpop.eup %1902  ;;  %v1196_v23 = vadd.f32 %v1740_v21, %v2512_v43  ;;  %v1190_v24 = vpop.f32.mrb[39].mxu1 }
 0x3fd   :  { %v1905_v25 = vpop.eup %1904  ;;  %1276 = vst [vmem:[%s2628_s10 + $0x58] sm:$0xff] %v1903_v22  ;;  %v1191_v26 = vadd.f32 %v2512_v43, %v1190_v24 }
 0x3fe   :  { %1275 = vst [vmem:[%s2628_s10 + $0x50] sm:$0xff] %v1905_v25  ;;  %1914 = vtanh.f32 %v1196_v23 }
 0x3ff   :  { %1916 = vtanh.f32 %v1191_v26  ;;  %v1743_v27 = vpop.f32.mrb[40].mxu1 }
 0x400   :  { %v1907_v28 = vpop.eup %1906  ;;  %v1206_v29 = vadd.f32 %v1743_v27, %v2512_v43  ;;  %v1200_v30 = vpop.f32.mrb[41].mxu1 }
 0x401   :  { %v1909_v31 = vpop.eup %1908  ;;  %1278 = vst [vmem:[%s2628_s10 + $0x68] sm:$0xff] %v1907_v28  ;;  %v1201_v32 = vadd.f32 %v2512_v43, %v1200_v30 }
 0x402   :  { %1277 = vst [vmem:[%s2628_s10 + $0x60] sm:$0xff] %v1909_v31  ;;  %1918 = vtanh.f32 %v1206_v29 }
 0x403   :  { %1920 = vtanh.f32 %v1201_v32  ;;  %v1746_v34 = vpop.f32.mrb[42].mxu1 }
 0x404   :  { %v1911_v35 = vpop.eup %1910  ;;  %v1216_v36 = vadd.f32 %v1746_v34, %v2512_v43  ;;  %v1210_v37 = vpop.f32.mrb[43].mxu1 }
 0x405   :  { %v1913_v38 = vpop.eup %1912  ;;  %1280 = vst [vmem:[%s2628_s10 + $0x78] sm:$0xff] %v1911_v35  ;;  %v1211_v39 = vadd.f32 %v2512_v43, %v1210_v37 }
 0x406   :  { %1279 = vst [vmem:[%s2628_s10 + $0x70] sm:$0xff] %v1913_v38  ;;  %1922 = vtanh.f32 %v1216_v36 }
 0x407   :  { %1924 = vtanh.f32 %v1211_v39  ;;  %v1749_v40 = vpop.f32.mrb[44].mxu1 }
 0x408   :  { %v1915_v41 = vpop.eup %1914  ;;  %v1226_v42 = vadd.f32 %v1749_v40, %v2512_v43  ;;  %v1220_v44 = vpop.f32.mrb[45].mxu1 }
 0x409   :  { %v1917_v45 = vpop.eup %1916  ;;  %1282 = vst [vmem:[%s2628_s10 + $0x88] sm:$0xff] %v1915_v41  ;;  %v1221_v46 = vadd.f32 %v2512_v43, %v1220_v44 }
 0x40a   :  { %1281 = vst [vmem:[%s2628_s10 + $0x80] sm:$0xff] %v1917_v45  ;;  %1926 = vtanh.f32 %v1226_v42 }
 0x40b   :  { %1928 = vtanh.f32 %v1221_v46  ;;  %v1752_v47 = vpop.f32.mrb[46].mxu1 }
 0x40c   :  { %v1919_v8 = vpop.eup %1918  ;;  %v1236_v48 = vadd.f32 %v1752_v47, %v2512_v43  ;;  %v1230_v49 = vpop.f32.mrb[47].mxu1 }
 0x40d   :  { %v1921_v50 = vpop.eup %1920  ;;  %1284 = vst [vmem:[%s2628_s10 + $0x98] sm:$0xff] %v1919_v8  ;;  %v1231_v51 = vadd.f32 %v2512_v43, %v1230_v49 }
 0x40e   :  { %1283 = vst [vmem:[%s2628_s10 + $0x90] sm:$0xff] %v1921_v50  ;;  %1930 = vtanh.f32 %v1236_v48 }
 0x40f   :  { %1932 = vtanh.f32 %v1231_v51 }
 0x410   :  { %v1923_v33 = vpop.eup %1922 }
 0x411   :  { %v1925_v52 = vpop.eup %1924  ;;  %1286 = vst [vmem:[%s2628_s10 + $0xa8] sm:$0xff] %v1923_v33 }
 0x412   :  { %1285 = vst [vmem:[%s2628_s10 + $0xa0] sm:$0xff] %v1925_v52 }
 0x414   :  { %v1927_v53 = vpop.eup %1926 }
 0x415   :  { %v1929_v54 = vpop.eup %1928  ;;  %1288 = vst [vmem:[%s2628_s10 + $0xb8] sm:$0xff] %v1927_v53 }
 0x416   :  { %1287 = vst [vmem:[%s2628_s10 + $0xb0] sm:$0xff] %v1929_v54 }
 0x418   :  { %v1931_v43 = vpop.eup %1930 }
 0x419   :  { %v1933_v55 = vpop.eup %1932  ;;  %1290 = vst [vmem:[%s2628_s10 + $0xc8] sm:$0xff] %v1931_v43 }
 0x41a   :  { %1289 = vst [vmem:[%s2628_s10 + $0xc0] sm:$0xff] %v1933_v55 }

</bundles_post_ra>
